<compile_context>
chip_gen: v7x
topology: tpu7x:2x2x1
jax: 0.10.0
libtpu: 0.0.40
codegen_flags: <defaults>
</compile_context>

<pallas_src>
import jax
import jax.numpy as jnp
from jax.experimental import pallas as pl
from jax.experimental.pallas import tpu as pltpu


def mlp_softmax_kernel(x_ref, w1_ref, b1_ref, w2_ref, b2_ref, o_ref):
    # fc1: bf16 x bf16 on the MXU, f32 accumulation; bias + ReLU in f32 (VPU).
    h = jnp.dot(x_ref[...], w1_ref[...], preferred_element_type=jnp.float32)
    h = jnp.maximum(h + b1_ref[...], 0.0)

    # fc2: bf16 operands, f32 accumulation. The lane-padded output columns
    # carry a huge negative bias so exp() underflows to exactly 0 for them.
    logits = jnp.dot(h.astype(w2_ref.dtype), w2_ref[...],
                     preferred_element_type=jnp.float32) + b2_ref[...]

    # Numerically stable softmax over the feature axis (dim=1), in f32.
    m = jnp.max(logits, axis=1, keepdims=True)
    e = jnp.exp(logits - m)
    denom = jnp.sum(e, axis=1, keepdims=True)
    # EUP approx reciprocal: denom >= 1 so it is well conditioned.
    o_ref[...] = (e * pl.reciprocal(denom, approx=True)).astype(o_ref.dtype)


def model_nn_forward(x, w1, b1, w2, b2, *, batch_tile=128):
    """x: (B, in) f32; w1: (in, hid); b1: (1, hid); w2: (hid, out); b2: (1, out).

    Weights are (in_features, out_features), i.e. transposed vs. torch.nn.Linear.
    Returns softmax(relu(x @ w1 + b1) @ w2 + b2, axis=1) as f32 of shape (B, out).
    """
    B, in_size = x.shape
    hid = w1.shape[1]
    out_size = w2.shape[1]

    # ---- layout plumbing (wrapper side, not the kernel) ----
    # Lane-dense output: pad the output feature dim up to a multiple of 128.
    n_pad = pl.cdiv(out_size, 128) * 128
    # Batch tile: a multiple of 8 sublanes, no larger than the padded batch.
    # (On v7x with its 64 MiB VMEM, shrink batch_tile if shapes grow large.)
    tb = min(batch_tile, ((B + 7) // 8) * 8)
    b_pad = pl.cdiv(B, tb) * tb

    x_p = jnp.zeros((b_pad, in_size), jnp.bfloat16).at[:B].set(x.astype(jnp.bfloat16))
    w1_b = w1.astype(jnp.bfloat16)
    w2_p = jnp.zeros((hid, n_pad), jnp.bfloat16).at[:, :out_size].set(
        w2.astype(jnp.bfloat16))
    b1_f = b1.astype(jnp.float32)
    # Padded logit columns get a very negative bias -> exp() == 0 under softmax.
    b2_p = jnp.full((1, n_pad), -1e9, jnp.float32).at[:, :out_size].set(
        b2.astype(jnp.float32))

    grid = (b_pad // tb,)
    cost = pl.CostEstimate(
        flops=2 * b_pad * (in_size * hid + hid * n_pad),
        transcendentals=b_pad * n_pad,
        bytes_accessed=(x_p.size * 2 + w1_b.size * 2 + w2_p.size * 2
                        + b1_f.size * 4 + b2_p.size * 4 + b_pad * n_pad * 4),
    )

    out_p = pl.pallas_call(
        mlp_softmax_kernel,
        out_shape=jax.ShapeDtypeStruct((b_pad, n_pad), jnp.float32),
        grid_spec=pltpu.PrefetchScalarGridSpec(
            num_scalar_prefetch=0,
            grid=grid,
            in_specs=[
                pl.BlockSpec((tb, in_size), lambda i: (i, 0)),    # x: batch-tiled
                pl.BlockSpec((in_size, hid), lambda i: (0, 0)),   # weights resident
                pl.BlockSpec((1, hid), lambda i: (0, 0)),
                pl.BlockSpec((hid, n_pad), lambda i: (0, 0)),
                pl.BlockSpec((1, n_pad), lambda i: (0, 0)),
            ],
            out_specs=pl.BlockSpec((tb, n_pad), lambda i: (i, 0)),
        ),
        compiler_params=pltpu.CompilerParams(
            # batch tiles are independent -> shard across TensorCores (v7x megacore)
            dimension_semantics=("parallel",),
        ),
        cost_estimate=cost,
    )(x_p, w1_b, b1_f, w2_p, b2_p)

    # Slice away the batch padding and the lane padding.
    return out_p[:B, :out_size]


if __name__ == "__main__":
    input_size, hidden_size, output_size = 32, 64, 16
    batch = 8

    key = jax.random.PRNGKey(0)
    kx, k1, k2, k3, k4 = jax.random.split(key, 5)

    # Deterministic inputs / parameters (uniform init like torch's default scale).
    x = jax.random.normal(kx, (batch, input_size), dtype=jnp.float32)
    lim1 = 1.0 / (input_size ** 0.5)
    w1 = jax.random.uniform(k1, (input_size, hidden_size), jnp.float32, -lim1, lim1)
    b1 = jax.random.uniform(k2, (1, hidden_size), jnp.float32, -lim1, lim1)
    lim2 = 1.0 / (hidden_size ** 0.5)
    w2 = jax.random.uniform(k3, (hidden_size, output_size), jnp.float32, -lim2, lim2)
    b2 = jax.random.uniform(k4, (1, output_size), jnp.float32, -lim2, lim2)

    out = model_nn_forward(x, w1, b1, w2, b2)
    out = jax.block_until_ready(out)

    # Reference in plain f32 JAX; tolerance loosened for bf16 MXU operands +
    # approx reciprocal (softmax outputs are in [0, 1], so atol dominates).
    h_ref = jnp.maximum(x @ w1 + b1, 0.0)
    logits_ref = h_ref @ w2 + b2
    ref = jax.nn.softmax(logits_ref, axis=1)
    assert out.shape == ref.shape, f"shape mismatch {out.shape} vs {ref.shape}"
    assert jnp.allclose(out, ref, atol=2e-2, rtol=2e-2), "mismatch vs reference"

    print("KERNEL_OK")
</pallas_src>

<mosaic_0001>
module attributes {stable_mosaic.version = 11 : i64} {
  func.func @mlp_softmax_kernel(%arg0: i32, %arg1: memref<8x32xbf16, #tpu.memory_space<vmem>>, %arg2: memref<32x64xbf16, #tpu.memory_space<vmem>>, %arg3: memref<1x64xf32, #tpu.memory_space<vmem>>, %arg4: memref<64x128xbf16, #tpu.memory_space<vmem>>, %arg5: memref<1x128xf32, #tpu.memory_space<vmem>>, %arg6: memref<8x128xf32, #tpu.memory_space<vmem>>) attributes {dimension_semantics = [#tpu.dimension_semantics<parallel>], iteration_bounds = array<i64: 1>, scalar_prefetch = 0 : i64, scratch_operands = 0 : i64, tpu.core_type = #tpu.core_type<tc>, window_params = [{transform_indices = @transform_0, window_bounds = array<i64: 8, 32>}, {pipeline_mode = #tpu.pipeline_mode<synchronous>, transform_indices = @transform_1, window_bounds = array<i64: 32, 64>}, {pipeline_mode = #tpu.pipeline_mode<synchronous>, transform_indices = @transform_2, window_bounds = array<i64: 1, 64>}, {pipeline_mode = #tpu.pipeline_mode<synchronous>, transform_indices = @transform_3, window_bounds = array<i64: 64, 128>}, {pipeline_mode = #tpu.pipeline_mode<synchronous>, transform_indices = @transform_4, window_bounds = array<i64: 1, 128>}, {transform_indices = @transform_5, window_bounds = array<i64: 8, 128>}]} {
    %c0 = arith.constant 0 : index
    %c0_0 = arith.constant 0 : index
    %0 = vector.load %arg1[%c0, %c0_0] : memref<8x32xbf16, #tpu.memory_space<vmem>>, vector<8x32xbf16>
    %c0_1 = arith.constant 0 : index
    %c0_2 = arith.constant 0 : index
    %1 = vector.load %arg2[%c0_1, %c0_2] : memref<32x64xbf16, #tpu.memory_space<vmem>>, vector<32x64xbf16>
    %cst = arith.constant dense<0.000000e+00> : vector<8x64xf32>
    %2 = tpu.matmul %0, %1, %cst {dimension_numbers = #tpu.dot_dimension_numbers<[1], [0], [0], [1], [0, 0, 1, 1], [], []>} : vector<8x32xbf16>, vector<32x64xbf16>, vector<8x64xf32> -> vector<8x64xf32>
    %c0_3 = arith.constant 0 : index
    %c0_4 = arith.constant 0 : index
    %3 = vector.load %arg3[%c0_3, %c0_4] : memref<1x64xf32, #tpu.memory_space<vmem>>, vector<1x64xf32>
    %4 = vector.broadcast %3 : vector<1x64xf32> to vector<8x64xf32>
    %5 = arith.addf %2, %4 : vector<8x64xf32>
    %cst_5 = arith.constant 0.000000e+00 : f32
    %6 = vector.broadcast %cst_5 : f32 to vector<8x64xf32>
    %7 = arith.maximumf %5, %6 : vector<8x64xf32>
    %8 = arith.truncf %7 : vector<8x64xf32> to vector<8x64xbf16>
    %c0_6 = arith.constant 0 : index
    %c0_7 = arith.constant 0 : index
    %9 = vector.load %arg4[%c0_6, %c0_7] : memref<64x128xbf16, #tpu.memory_space<vmem>>, vector<64x128xbf16>
    %cst_8 = arith.constant dense<0.000000e+00> : vector<8x128xf32>
    %10 = tpu.matmul %8, %9, %cst_8 {dimension_numbers = #tpu.dot_dimension_numbers<[1], [0], [0], [1], [0, 0, 1, 1], [], []>} : vector<8x64xbf16>, vector<64x128xbf16>, vector<8x128xf32> -> vector<8x128xf32>
    %c0_9 = arith.constant 0 : index
    %c0_10 = arith.constant 0 : index
    %11 = vector.load %arg5[%c0_9, %c0_10] : memref<1x128xf32, #tpu.memory_space<vmem>>, vector<1x128xf32>
    %12 = vector.broadcast %11 : vector<1x128xf32> to vector<8x128xf32>
    %13 = arith.addf %10, %12 : vector<8x128xf32>
    %cst_11 = arith.constant dense<0xFF800000> : vector<8xf32>
    %14 = vector.multi_reduction <maximumf>, %13, %cst_11 [1] : vector<8x128xf32> to vector<8xf32>
    %15 = vector.shape_cast %14 : vector<8xf32> to vector<8x1xf32>
    %16 = vector.broadcast %15 : vector<8x1xf32> to vector<8x128xf32>
    %17 = arith.subf %13, %16 : vector<8x128xf32>
    %18 = math.exp %17 : vector<8x128xf32>
    %cst_12 = arith.constant dense<0.000000e+00> : vector<8xf32>
    %19 = vector.multi_reduction <add>, %18, %cst_12 [1] : vector<8x128xf32> to vector<8xf32>
    %20 = vector.shape_cast %19 : vector<8xf32> to vector<8x1xf32>
    %21 = tpu.reciprocal %20 {approx = true} : vector<8x1xf32> -> vector<8x1xf32>
    %22 = vector.broadcast %21 : vector<8x1xf32> to vector<8x128xf32>
    %23 = arith.mulf %18, %22 : vector<8x128xf32>
    %c0_13 = arith.constant 0 : index
    %c0_14 = arith.constant 0 : index
    %24 = vector.load %arg6[%c0_13, %c0_14] : memref<8x128xf32, #tpu.memory_space<vmem>>, vector<8x128xf32>
    tpu.vector_store %arg6[%c0_13, %c0_14], %23 {strides = array<i32>} : memref<8x128xf32, #tpu.memory_space<vmem>>, vector<8x128xf32>,
    return
  }
  func.func @transform_0(%arg0: i32) -> (i32, i32) {
    %c0_i32 = arith.constant 0 : i32
    %c0_i32_0 = arith.constant 0 : i32
    return %arg0, %c0_i32 : i32, i32
  }
  func.func @transform_1(%arg0: i32) -> (i32, i32) {
    %c0_i32 = arith.constant 0 : i32
    %c0_i32_0 = arith.constant 0 : i32
    %c0_i32_1 = arith.constant 0 : i32
    return %c0_i32, %c0_i32_0 : i32, i32
  }
  func.func @transform_2(%arg0: i32) -> (i32, i32) {
    %c0_i32 = arith.constant 0 : i32
    %c0_i32_0 = arith.constant 0 : i32
    %c0_i32_1 = arith.constant 0 : i32
    return %c0_i32, %c0_i32_0 : i32, i32
  }
  func.func @transform_3(%arg0: i32) -> (i32, i32) {
    %c0_i32 = arith.constant 0 : i32
    %c0_i32_0 = arith.constant 0 : i32
    %c0_i32_1 = arith.constant 0 : i32
    return %c0_i32, %c0_i32_0 : i32, i32
  }
  func.func @transform_4(%arg0: i32) -> (i32, i32) {
    %c0_i32 = arith.constant 0 : i32
    %c0_i32_0 = arith.constant 0 : i32
    %c0_i32_1 = arith.constant 0 : i32
    return %c0_i32, %c0_i32_0 : i32, i32
  }
  func.func @transform_5(%arg0: i32) -> (i32, i32) {
    %c0_i32 = arith.constant 0 : i32
    %c0_i32_0 = arith.constant 0 : i32
    return %arg0, %c0_i32 : i32, i32
  }
}

</mosaic_0001>

<bundles_post_ra>
// kernel: tpu_custom_call.1
= control target key start
LH: loop header
LB: loop body
LE: loop exit
PB: predicated region body
PF: predicated region fallthrough
CT: control target
= control target key end

     0   :  { %10 = vsyncpa [#allocation3], 0  ;;  %s488_s0 = inlined_call_operand.hbm [shape: bf16[8,32], index: 0, kind: input, shape index: {}]   ;;  %s489_s1 = inlined_call_operand.hbm [shape: bf16[32,64], index: 1, kind: input, shape index: {}]   ;;  %s490_s2 = inlined_call_operand.vmem [shape: f32[1,64], index: 2, kind: input, shape index: {}]   ;;  %s491_s3 = inlined_call_operand.hbm [shape: bf16[64,128], index: 3, kind: input, shape index: {}]   ;;  %s492_s4 = inlined_call_operand.vmem [shape: f32[1,128], index: 4, kind: input, shape index: {}]   ;;  %s493_s5 = inlined_call_operand.hbm [shape: f32[8,128], index: 5, kind: output, shape index: {}]  }
   0x1   :  { %11 = vsyncpa [#allocation6], 0 }
   0x2   :  { %12 = vsyncpa [#allocation4], 0  ;;  %s390_s18 = smov [#allocation5]   ;;  %s296_s22 = scalar_lea.hbm %s489_s1, 256 }
   0x3   :  { %s28_s19 = sshll.u32 %s390_s18, 4  ;;  %p297_p0 = scmp.ne.s32.totalorder %s489_s1, %s296_s22  ;;  %s29_s19 = int_to_ptr.vmem [resolvable:$true] %s28_s19 }
   0x4   :  { %p300_p1 = scmp.lt.u32.totalorder %s296_s22, %s489_s1 }
   0x6   :  { %p302_p2 = pnand %p300_p1, %p297_p0 }
   0x8   :  { %305 = shalt.err (!%p302_p2)
}
   0x9   :  { %s306_s27 = scalar_lea.vmem %s29_s19, 256  ;;  %p311_p4 = scmp.lt.s32.totalorder %s29_s19, %s29_s19 }
   0xa   :  { %p307_p3 = scmp.ne.s32.totalorder %s29_s19, %s306_s27  ;;  %p312_p5 = scmp.lt.s32.totalorder %s306_s27, %s306_s27 }
   0xc   :  { %p313_p6 = por %p312_p5, %p311_p4 }
   0xe   :  { %p314_p7 = pnand %p313_p6, %p307_p3 }
  0x10   :  { %317 = shalt.err (!%p314_p7)
}
  0x11   :  { %s391_s28 = smov 64   ;;  %s392_s29 = smov 4  }
  0x12   :  { %34 = dma.hbm_to_vmem [thread:$0]  %s489_s1, 256, %s29_s19, [#allocation6], %s391_s28, %s391_s28, %s392_s29  }
  0x13   :  { %s393_s7 = smov [#allocation2]   ;;  %s394_s9 = smov [#allocation7]  }
  0x14   :  { %s19_s8 = sshll.u32 %s393_s7, 4  ;;  %s42_s10 = sshll.u32 %s394_s9, 4  ;;  %s20_s8 = int_to_ptr.vmem [resolvable:$true] %s19_s8  ;;  %s43_s10 = int_to_ptr.vmem [resolvable:$true] %s42_s10 }
  0x15   :  { %s318_s13 = scalar_lea.hbm %s488_s0, 64 }
  0x16   :  { %p319_p8 = scmp.ne.s32.totalorder %s488_s0, %s318_s13  ;;  %p322_p9 = scmp.lt.u32.totalorder %s318_s13, %s488_s0 }
  0x18   :  { %p324_p10 = pnand %p322_p9, %p319_p8 }
  0x1a   :  { %327 = shalt.err (!%p324_p10)
}
  0x1b   :  { %s328_s1 = scalar_lea.vmem %s20_s8, 64  ;;  %p333_p12 = scmp.lt.s32.totalorder %s20_s8, %s20_s8 }
  0x1c   :  { %p329_p11 = scmp.ne.s32.totalorder %s20_s8, %s328_s1  ;;  %p334_p13 = scmp.lt.s32.totalorder %s328_s1, %s328_s1 }
  0x1e   :  { %p335_p0 = por %p334_p13, %p333_p12 }
  0x20   :  { %p336_p1 = pnand %p335_p0, %p329_p11 }
  0x22   :  { %339 = shalt.err (!%p336_p1)
}
  0x23   :  { %22 = dma.hbm_to_vmem [thread:$0]  %s488_s0, 64, %s20_s8, [#allocation3]  }
  0x24   :  { %s340_s22 = scalar_lea.hbm %s491_s3, 512 }
  0x25   :  { %p341_p2 = scmp.ne.s32.totalorder %s491_s3, %s340_s22  ;;  %p344_p3 = scmp.lt.u32.totalorder %s340_s22, %s491_s3 }
  0x27   :  { %p346_p4 = pnand %p344_p3, %p341_p2 }
  0x29   :  { %349 = shalt.err (!%p346_p4)
}
  0x2a   :  { %s350_s27 = scalar_lea.vmem %s43_s10, 512  ;;  %p355_p6 = scmp.lt.s32.totalorder %s43_s10, %s43_s10 }
  0x2b   :  { %p351_p5 = scmp.ne.s32.totalorder %s43_s10, %s350_s27  ;;  %p356_p7 = scmp.lt.s32.totalorder %s350_s27, %s350_s27 }
  0x2d   :  { %p357_p8 = por %p356_p7, %p355_p6 }
  0x2f   :  { %p358_p9 = pnand %p357_p8, %p351_p5 }
  0x31   :  { %361 = shalt.err (!%p358_p9)
}
  0x32   :  { %48 = dma.hbm_to_vmem [thread:$0]  %s491_s3, 512, %s43_s10, [#allocation6], %s391_s28, %s391_s28, %s392_s29  }
  0x33   :  { %384 = dma.done.wait [#allocation3], 64  }
  0x34   :  { %385 = vsyncadd [#allocation3], 4294967232 }
  0x35   :  { %386 = dma.done.wait [#allocation6], 768  }
  0x36   :  { %387 = vsyncadd [#allocation6], 4294966528  ;;  %v395_v0 = vmov 0.0   ;;  %vm396_vm0 = vmmov 0   ;;  %v286_v1 = vld [vmem:[#allocation5] sm:$0xff]   ;;  %v287_v2 = vld [vmem:[#allocation5 + $0x8] sm:$0xff]  }
  0x37   :  { %258 = vmatprep.subr.bf16.mxu0 %v395_v0  ;;  %262 = vmatprep.mubr.msk.bf16.mxu0 %vm396_vm0, %v395_v0  ;;  %v288_v3 = vld [vmem:[#allocation7] sm:$0xff]   ;;  %v289_v4 = vld [vmem:[#allocation7 + $0x8] sm:$0xff]   ;;  %vm85_vm1 = vcmask 261120   ;;  %v290_v6 = vld [vmem:[#allocation7 + $0x10] sm:$0xff]   ;;  %vm170_vm2 = vcmask 523264  }
  0x38   :  { %266 = vmatprep.subr.bf16.mxu1 %v395_v0  ;;  %274 = vmatprep.mubr.msk.bf16.mxu1 %vm396_vm0, %v395_v0  ;;  %v61_v5 = vld [vmem:[#allocation2] sm:$0xf]  ;;  %v291_v7 = vld [vmem:[#allocation7 + $0x18] sm:$0xff]  }
  0x39   :  { %259 = vmatpush3.bf16.msra.mxu0 %v286_v1  ;;  %267 = vmatpush3.bf16.msra.mxu1 %v288_v3  ;;  %v240_v8 = vld [vmem:[%s490_s2] ss:$0 sm:$0xff]  ;;  %s397_s2 = smov [#allocation8]  }
  0x3a   :  { %260 = vmatprep.subr.bf16.mxu0 %v395_v0  ;;  %268 = vmatprep.subr.bf16.mxu1 %v395_v0  ;;  %v244_v16 = vld [vmem:[%s492_s4] ss:$0 sm:$0xff]  ;;  %s230_s7 = sshll.u32 %s397_s2, 4  ;;  %s231_s7 = int_to_ptr.vmem [resolvable:$true] %s230_s7 }
  0x3b   :  { %s362_s4 = scalar_lea.vmem %s231_s7, 128  ;;  %p367_p11 = scmp.lt.s32.totalorder %s231_s7, %s231_s7 }
  0x3c   :  { %p363_p10 = scmp.ne.s32.totalorder %s231_s7, %s362_s4  ;;  %p368_p12 = scmp.lt.s32.totalorder %s362_s4, %s362_s4 }
  0x3d   :  { %261 = vmatpush3.bf16.msra.mxu0 %v287_v2  ;;  %269 = vmatpush3.bf16.msra.mxu1 %v289_v4 }
  0x3e   :  { %270 = vmatprep.subr.bf16.mxu1 %v395_v0  ;;  %p369_p13 = por %p368_p12, %p367_p11 }
  0x40   :  { %263 = vmatmul.mubr.msk.bf16.vlgmr.msra.gmra.mrb[0].mxu0 %vm85_vm1, %v61_v5  ;;  %p370_p0 = pnand %p369_p13, %p363_p10 }
  0x41   :  { %271 = vmatpush3.bf16.msra.mxu1 %v290_v6 }
  0x42   :  { %272 = vmatprep.subr.bf16.mxu1 %v395_v0 }
  0x45   :  { %273 = vmatpush3.bf16.msra.mxu1 %v291_v7 }
 0x113   :  { %v123_v9 = vpop.f32.mrb[0].mxu0 }
 0x114   :  { %v124_v10 = vadd.f32 %v240_v8, %v123_v9  ;;  %v264_v11 = vpop.f32.mrb[1].mxu0 }
 0x115   :  { %v126_v12 = vpop.f32.mrb[2].mxu0 }
 0x116   :  { %v129_v13 = vmax.f32 %v124_v10, 0.0  ;;  %v265_v14 = vpop.f32.mrb[3].mxu0 }
 0x118   :  { %v130_v15 = vpack.c.bf16 %v129_v13, %v129_v13 }
 0x11a   :  { %275 = vmatmul.mubr.msk.bf16.vlgmr.msra.gmra.mrb[0].mxu1 %vm170_vm2, %v130_v15 }
 0x1ed   :  { %v208_v17 = vpop.f32.mrb[0].mxu1 }
 0x1ee   :  { %v209_v18 = vadd.f32 %v244_v16, %v208_v17  ;;  %v276_v19 = vpop.f32.mrb[1].mxu1 }
 0x1ef   :  { %v211_v20 = vpop.f32.mrb[2].mxu1 }
 0x1f0   :  { %214 = vmax.xlane.f32.xlu0 %v209_v18  ;;  %v277_v21 = vpop.f32.mrb[3].mxu1 }
 0x27d   :  { %v215_v22 = vpop.xlane.xlu0 %214 }
 0x27e   :  { %v216_v23 = vsub.f32 %v209_v18, %v215_v22 }
 0x280   :  { %v217_v24 = vmul.f32 1.442695, %v216_v23 }
 0x282   :  { %292 = vpow2.f32 %v217_v24 }
 0x28c   :  { %v293_v25 = vpop.eup %292 }
 0x28d   :  { %219 = vadd.xlane.f32.xlu0 %v293_v25 }
 0x31a   :  { %v220_v26 = vpop.xlane.xlu0 %219 }
 0x31b   :  { %294 = vrcp.f32 %v220_v26 }
 0x325   :  { %v295_v27 = vpop.eup %294 }
 0x326   :  { %v222_v28 = vmul.f32 %v295_v27, %v293_v25 }
 0x328   :  { %223 = vst [vmem:[#allocation8] sm:$0xff] %v222_v28 }
 0x329   :  { %373 = shalt.err (!%p370_p0)
}
 0x32a   :  { %s374_s10 = scalar_lea.hbm %s493_s5, 128 }
 0x32b   :  { %p375_p1 = scmp.ne.s32.totalorder %s493_s5, %s374_s10  ;;  %p378_p2 = scmp.lt.u32.totalorder %s374_s10, %s493_s5 }
 0x32d   :  { %p380_p3 = pnand %p378_p2, %p375_p1 }
 0x32f   :  { %383 = shalt.err (!%p380_p3)
}
 0x330   :  { %233 = dma.vmem_to_hbm [thread:$0]  %s231_s7, 128, %s493_s5, [#allocation4]  }
 0x331   :  { %388 = dma.done.wait [#allocation4], 128  }
 0x332   :  { %389 = vsyncadd [#allocation4], 4294967168 }
 0x333   :  { %237 = vsyncpa [#allocation3], 1 }
 0x334   :  { %238 = vsyncpa [#allocation6], 1 }
 0x335   :  { %239 = vsyncpa [#allocation4], 1 }

</bundles_post_ra>
